<compile_context>
chip_gen: v7x
topology: tpu7x:2x2x1
jax: 0.10.0
libtpu: 0.0.40
codegen_flags: <defaults>
</compile_context>

<pallas_src>
import numpy as np
import jax
import jax.numpy as jnp
from jax import lax
from jax.experimental import pallas as pl
from jax.experimental.pallas import tpu as pltpu

EPS = 1e-12          # matches torch F.normalize eps
_LANE = 128
_VMEM_LIMIT_BYTES = 56 << 20   # fits v7x's 64 MiB/TC with headroom; >> 16/32 MiB defaults
_VMEM_TB_BUDGET = 40 << 20     # budget used for picking the batch block


def _round_up(v, m):
    return (v + m - 1) // m * m


def leam_forward(x, x_mask, params, ngram, block_b=None):
    """LEAM forward.  Returns (logits (B,C), logits_class (C,C), Att_v (B,L,1))."""
    B, L = x.shape
    C, E = params["emb_y"].shape
    H = params["w1x"].shape[1]
    K = int(ngram)
    assert K % 2 == 1, "Conv1d(padding=ngram//2) only preserves length L for odd ngram"
    p = (K - 1) // 2

    Cp = _round_up(C, _LANE)     # lane-dense class dim
    Hp = _round_up(H, _LANE)     # lane-dense hidden dim
    Ep = _round_up(E, _LANE)

    # ---------------- plain-XLA glue (gather + weight prep) -------------------
    # Gather straight into bf16 so the dominant HBM stream is half-width.
    xv = jnp.take(params["emb_x"].astype(jnp.bfloat16), x, axis=0)        # (B, L, E)
    mask3 = x_mask[..., None].astype(jnp.float32)                         # (B, L, 1)

    wc = params["emb_y"].astype(jnp.float32)                              # (C, E)
    # Hoisted: F.normalize(W_class.T, dim=0) == row-normalize class embeddings.
    wn = wc / jnp.maximum(jnp.linalg.norm(wc, axis=1, keepdims=True), EPS)
    wnT = jnp.zeros((E, Cp), jnp.float32).at[:, :C].set(wn.T)             # (E, Cp)

    # Conv taps stacked into one (K*Cp, Cp) matrix: row block k holds
    # conv_w[:, :, k].T (C_in x C_out), zero-padded to Cp.
    convw_t = jnp.transpose(params["conv_w"], (2, 1, 0)).astype(jnp.float32)  # (K,Cin,Cout)
    convw = jnp.zeros((K, Cp, Cp), jnp.float32).at[:, :C, :C].set(convw_t)
    convw = convw.reshape(K * Cp, Cp)
    convb = jnp.zeros((1, Cp), jnp.float32).at[0, :C].set(
        params["conv_b"].reshape(C).astype(jnp.float32))

    w1 = jnp.zeros((E, Hp), jnp.float32).at[:, :H].set(params["w1x"].astype(jnp.float32))
    b1 = jnp.zeros((1, Hp), jnp.float32).at[:, :H].set(
        params["b1x"].reshape(1, H).astype(jnp.float32))
    w2 = jnp.zeros((Hp, Cp), jnp.float32).at[:H, :C].set(params["w2x"].astype(jnp.float32))
    b2 = jnp.zeros((1, Cp), jnp.float32).at[:, :C].set(
        params["b2x"].reshape(1, C).astype(jnp.float32))

    weight_bytes = 2 * 4 * (E * Cp + K * Cp * Cp + Cp + E * Hp + Hp + Hp * Cp + Cp)

    # ---------------- batch blocking (VMEM-budgeted) ---------------------------
    if block_b is not None:
        TB = max(1, int(block_b))
    else:
        per_row = 0
        per_row += 2 * L * Ep * 2            # xv bf16 input, double buffered, lane-padded
        per_row += 2 * L * _LANE * 4         # (.,L,1) mask column pads to 128 lanes
        per_row += 2 * _round_up(L, _LANE) * 4   # (.,L) Att_v output
        per_row += 2 * Cp * 4                # (.,Cp) logits output
        # in-kernel f32 temporaries (upcast xv, G, K shifted taps, concat, att, ...)
        per_row += L * (Ep + (2 * K + 3) * Cp) * 4
        avail = max(_VMEM_TB_BUDGET - weight_bytes, per_row)
        TB = max(1, int(avail // per_row))
        TB = min(TB, B)
        # Split across the two v7x TensorCores only when each half is still fat.
        if TB == B and B > 1 and B * L * Ep * 2 > (4 << 20):
            TB = -(-B // 2)
    if TB < B:
        TB = _round_up(TB, 8)                # out-block sublane dim must be 8-aligned
    nb = pl.cdiv(B, TB)
    Bp = nb * TB
    if Bp != B:
        xv = jnp.concatenate([xv, jnp.zeros((Bp - B, L, E), xv.dtype)], axis=0)
        # Pad mask with ones so padded rows stay finite (they are sliced off).
        mask3 = jnp.concatenate([mask3, jnp.ones((Bp - B, L, 1), jnp.float32)], axis=0)

    def kernel(xv_ref, m_ref, wnT_ref, convw_ref, convb_ref,
               w1_ref, b1_ref, w2_ref, b2_ref, logits_ref, attv_ref):
        TBk, Lk, Ek = xv_ref.shape
        Cpk = wnT_ref.shape[1]

        xv3 = xv_ref[...].astype(jnp.float32)                # (TB, L, E)
        m3 = m_ref[...]                                      # (TB, L, 1)

        # F.normalize(x * mask, p=2, dim=-1): lane reduction + EUP rsqrt.
        xv1 = xv3 * m3
        ssq = jnp.sum(xv1 * xv1, axis=2, keepdims=True)      # (TB, L, 1)
        xn3 = xv1 * lax.rsqrt(jnp.maximum(ssq, EPS * EPS))   # == x / max(||x||, EPS)

        # G = x_norm @ W_class_norm -> (TB*L, Cp); padded class lanes are zero.
        g = jnp.dot(xn3.reshape(TBk * Lk, Ek), wnT_ref[...],
                    preferred_element_type=jnp.float32)
        g3 = g.reshape(TBk, Lk, Cpk)

        # Conv1d(C -> C, kernel=K, padding=p) over the sequence as ONE matmul:
        # K shifted views of G (XLU sublane rolls + boundary masks, no scratch,
        # no unaligned slices) lane-concatenated to (TB*L, K*Cp), then a single
        # contraction against the pre-stacked (K*Cp, Cp) weight.
        if K > 1:
            l_idx = lax.broadcasted_iota(jnp.int32, (TBk, Lk, Cpk), 1)
        taps = []
        for k in range(K):                                   # K is tiny & static
            d = k - p
            if d == 0:
                taps.append(g3)
            else:
                rolled = pltpu.roll(g3, shift=(-d) % Lk, axis=1)
                valid = (l_idx < Lk - d) if d > 0 else (l_idx >= -d)
                taps.append(jnp.where(valid, rolled, 0.0))
        gcat = taps[0] if K == 1 else jnp.concatenate(taps, axis=2)   # (TB, L, K*Cp)
        att = jnp.dot(gcat.reshape(TBk * Lk, K * Cpk), convw_ref[...],
                      preferred_element_type=jnp.float32) + convb_ref[...]
        att3 = jnp.maximum(att, 0.0).reshape(TBk, Lk, Cpk)

        # max over classes (padded lanes are 0 and att>=0, so the max is
        # unaffected), then masked partial softmax over the sequence.
        attv3 = jnp.max(att3, axis=2, keepdims=True)         # (TB, L, 1)
        # NOTE: exp without max-subtraction, to match the reference module.
        e3 = jnp.exp(attv3) * m3
        s3 = jnp.sum(e3, axis=1, keepdims=True)              # (TB, 1, 1)
        score3 = e3 * pl.reciprocal(s3, approx=True)         # (TB, L, 1)

        # attention pooling of (unmasked) word vectors + 2-layer MLP head.
        h_enc = jnp.sum(xv3 * score3, axis=1)                # (TB, E)
        h1 = jnp.maximum(jnp.dot(h_enc, w1_ref[...],
                                 preferred_element_type=jnp.float32)
                         + b1_ref[...], 0.0)                 # (TB, Hp)
        logits_ref[...] = (jnp.dot(h1, w2_ref[...],
                                   preferred_element_type=jnp.float32)
                           + b2_ref[...])                    # (TB, Cp) lane-dense
        # Lane-dense Att_v slab; reshaped to (B, L, 1) in the wrapper.
        attv_ref[...] = jnp.max(att3, axis=2)                # (TB, L)

    flops = int(2 * Bp * L * E * Cp + 2 * Bp * L * K * Cp * Cp
                + 2 * Bp * (E * Hp + Hp * Cp) + 8 * Bp * L * E)
    bytes_accessed = int(Bp * L * E * 2 + Bp * L * 4
                         + Bp * (Cp + L) * 4 + weight_bytes // 2)
    cost = pl.CostEstimate(flops=flops, transcendentals=int(2 * Bp * L),
                           bytes_accessed=bytes_accessed)

    logits_p, attv_p = pl.pallas_call(
        kernel,
        out_shape=(jax.ShapeDtypeStruct((Bp, Cp), jnp.float32),
                   jax.ShapeDtypeStruct((Bp, L), jnp.float32)),
        grid=(nb,),
        in_specs=[
            pl.BlockSpec((TB, L, E), lambda b: (b, 0, 0)),   # word vectors (bf16)
            pl.BlockSpec((TB, L, 1), lambda b: (b, 0, 0)),   # mask column
            pl.BlockSpec((E, Cp), lambda b: (0, 0)),         # normalized class emb^T
            pl.BlockSpec((K * Cp, Cp), lambda b: (0, 0)),    # stacked conv taps
            pl.BlockSpec((1, Cp), lambda b: (0, 0)),         # conv bias
            pl.BlockSpec((E, Hp), lambda b: (0, 0)),         # H1_x weight
            pl.BlockSpec((1, Hp), lambda b: (0, 0)),         # H1_x bias
            pl.BlockSpec((Hp, Cp), lambda b: (0, 0)),        # H2_x weight
            pl.BlockSpec((1, Cp), lambda b: (0, 0)),         # H2_x bias
        ],
        out_specs=(pl.BlockSpec((TB, Cp), lambda b: (b, 0)),
                   pl.BlockSpec((TB, L), lambda b: (b, 0))),
        compiler_params=pltpu.CompilerParams(
            dimension_semantics=("parallel",),
            vmem_limit_bytes=int(_VMEM_LIMIT_BYTES)),
        cost_estimate=cost,
    )(xv, mask3, wnT, convw, convb, w1, b1, w2, b2)

    logits = logits_p[:B, :C]
    attv = attv_p[:B][..., None]                             # (B, L, 1)

    # Class-embedding MLP branch: batch-independent and tiny ((C,E)@(E,H) +
    # (C,H)@(H,C)); left to plain XLA instead of a separate kernel launch.
    h1y = jnp.maximum(jnp.dot(wc, params["w1y"]) + params["b1y"], 0.0)
    logits_class = jnp.dot(h1y, params["w2y"]) + params["b2y"]

    return logits, logits_class, attv


def leam_reference(x, x_mask, params, ngram):
    """Pure-JAX reference mirroring the PyTorch forward (eval mode), f32-accurate."""
    hi = lax.Precision.HIGHEST
    K = ngram
    p = (K - 1) // 2
    xv = jnp.take(params["emb_x"], x, axis=0)
    wc = params["emb_y"]
    m = x_mask[..., None].astype(jnp.float32)
    B, L, E = xv.shape
    xv1 = xv * m
    xn = xv1 / jnp.maximum(jnp.linalg.norm(xv1, axis=-1, keepdims=True), EPS)
    wn_t = wc.T / jnp.maximum(jnp.linalg.norm(wc.T, axis=0, keepdims=True), EPS)
    G = jnp.einsum("ble,ec->blc", xn, wn_t, precision=hi)
    Gc = jnp.transpose(G, (0, 2, 1))                         # (B, C, L)
    gpad = jnp.pad(Gc, ((0, 0), (0, 0), (p, p)))
    conv = params["conv_b"][None, :, None]
    for k in range(K):
        conv = conv + jnp.einsum("oi,bil->bol", params["conv_w"][:, :, k],
                                 gpad[:, :, k:k + L], precision=hi)
    att = jnp.transpose(jnp.maximum(conv, 0.0), (0, 2, 1))
    attv = jnp.max(att, axis=-1, keepdims=True)
    e = jnp.exp(attv) * m
    score = e / jnp.sum(e, axis=1, keepdims=True)
    h_enc = jnp.sum(xv * score, axis=1)
    h1 = jnp.maximum(jnp.dot(h_enc, params["w1x"], precision=hi) + params["b1x"], 0.0)
    logits = jnp.dot(h1, params["w2x"], precision=hi) + params["b2x"]
    h1y = jnp.maximum(jnp.dot(wc, params["w1y"], precision=hi) + params["b1y"], 0.0)
    logits_class = jnp.dot(h1y, params["w2y"], precision=hi) + params["b2y"]
    return logits, logits_class, attv


if __name__ == "__main__":
    # Small "opt": n_words=50, num_class=4, embed_size=32, ngram=3, H_dis=32
    B, L = 2, 8
    V, C, E, H, K = 50, 4, 32, 32, 3

    key = jax.random.PRNGKey(0)
    ks = jax.random.split(key, 14)
    params = {
        "emb_x": 0.5 * jax.random.normal(ks[0], (V, E), jnp.float32),
        "emb_y": 0.5 * jax.random.normal(ks[1], (C, E), jnp.float32),
        "conv_w": 0.3 * jax.random.normal(ks[2], (C, C, K), jnp.float32),
        "conv_b": 0.1 * jax.random.normal(ks[3], (C,), jnp.float32),
        "w1x": 0.2 * jax.random.normal(ks[4], (E, H), jnp.float32),
        "b1x": 0.1 * jax.random.normal(ks[5], (1, H), jnp.float32),
        "w2x": 0.2 * jax.random.normal(ks[6], (H, C), jnp.float32),
        "b2x": 0.1 * jax.random.normal(ks[7], (1, C), jnp.float32),
        "w1y": 0.2 * jax.random.normal(ks[8], (E, H), jnp.float32),
        "b1y": 0.1 * jax.random.normal(ks[9], (1, H), jnp.float32),
        "w2y": 0.2 * jax.random.normal(ks[10], (H, C), jnp.float32),
        "b2y": 0.1 * jax.random.normal(ks[11], (1, C), jnp.float32),
    }

    x = jax.random.randint(ks[12], (B, L), 0, V, dtype=jnp.int32)
    lengths = jnp.array([[L], [L - 3]], dtype=jnp.int32)
    x_mask = (jnp.arange(L)[None, :] < lengths).astype(jnp.float32)   # (B, L)

    logits, logits_class, attv = leam_forward(x, x_mask, params, K)
    jax.block_until_ready((logits, logits_class, attv))

    ref_logits, ref_logits_class, ref_attv = leam_reference(x, x_mask, params, K)
    # xv streams into the kernel as bf16 and the in-kernel matmuls run at
    # default (bf16 single-pass) MXU precision; the reference is f32-accurate,
    # hence the 3e-2 tolerance.
    np.testing.assert_allclose(np.asarray(logits), np.asarray(ref_logits),
                               rtol=3e-2, atol=3e-2)
    np.testing.assert_allclose(np.asarray(logits_class), np.asarray(ref_logits_class),
                               rtol=3e-2, atol=3e-2)
    np.testing.assert_allclose(np.asarray(attv), np.asarray(ref_attv),
                               rtol=3e-2, atol=3e-2)

    assert logits.shape == (B, C)
    assert logits_class.shape == (C, C)
    assert attv.shape == (B, L, 1)
    print("KERNEL_OK")
</pallas_src>

<mosaic_0001>
module attributes {stable_mosaic.version = 11 : i64} {
  func.func @kernel(%arg0: i32, %arg1: memref<2x8x32xbf16, #tpu.memory_space<vmem>>, %arg2: memref<2x8x1xf32, #tpu.memory_space<vmem>>, %arg3: memref<32x128xf32, #tpu.memory_space<vmem>>, %arg4: memref<384x128xf32, #tpu.memory_space<vmem>>, %arg5: memref<1x128xf32, #tpu.memory_space<vmem>>, %arg6: memref<32x128xf32, #tpu.memory_space<vmem>>, %arg7: memref<1x128xf32, #tpu.memory_space<vmem>>, %arg8: memref<128x128xf32, #tpu.memory_space<vmem>>, %arg9: memref<1x128xf32, #tpu.memory_space<vmem>>, %arg10: memref<2x128xf32, #tpu.memory_space<vmem>>, %arg11: memref<2x8xf32, #tpu.memory_space<vmem>>) attributes {dimension_semantics = [#tpu.dimension_semantics<parallel>], iteration_bounds = array<i64: 1>, scalar_prefetch = 0 : i64, scratch_operands = 0 : i64, tpu.core_type = #tpu.core_type<tc>, window_params = [{transform_indices = @transform_0, window_bounds = array<i64: 2, 8, 32>}, {transform_indices = @transform_1, window_bounds = array<i64: 2, 8, 1>}, {pipeline_mode = #tpu.pipeline_mode<synchronous>, transform_indices = @transform_2, window_bounds = array<i64: 32, 128>}, {pipeline_mode = #tpu.pipeline_mode<synchronous>, transform_indices = @transform_3, window_bounds = array<i64: 384, 128>}, {pipeline_mode = #tpu.pipeline_mode<synchronous>, transform_indices = @transform_4, window_bounds = array<i64: 1, 128>}, {pipeline_mode = #tpu.pipeline_mode<synchronous>, transform_indices = @transform_5, window_bounds = array<i64: 32, 128>}, {pipeline_mode = #tpu.pipeline_mode<synchronous>, transform_indices = @transform_6, window_bounds = array<i64: 1, 128>}, {pipeline_mode = #tpu.pipeline_mode<synchronous>, transform_indices = @transform_7, window_bounds = array<i64: 128, 128>}, {pipeline_mode = #tpu.pipeline_mode<synchronous>, transform_indices = @transform_8, window_bounds = array<i64: 1, 128>}, {transform_indices = @transform_9, window_bounds = array<i64: 2, 128>}, {transform_indices = @transform_10, window_bounds = array<i64: 2, 8>}]} {
    %c0 = arith.constant 0 : index
    %c0_0 = arith.constant 0 : index
    %c0_1 = arith.constant 0 : index
    %0 = vector.load %arg1[%c0, %c0_0, %c0_1] : memref<2x8x32xbf16, #tpu.memory_space<vmem>>, vector<2x8x32xbf16>
    %1 = arith.extf %0 : vector<2x8x32xbf16> to vector<2x8x32xf32>
    %c0_2 = arith.constant 0 : index
    %c0_3 = arith.constant 0 : index
    %c0_4 = arith.constant 0 : index
    %2 = vector.load %arg2[%c0_2, %c0_3, %c0_4] : memref<2x8x1xf32, #tpu.memory_space<vmem>>, vector<2x8x1xf32>
    %3 = vector.broadcast %2 : vector<2x8x1xf32> to vector<2x8x32xf32>
    %4 = arith.mulf %1, %3 : vector<2x8x32xf32>
    %5 = arith.mulf %4, %4 : vector<2x8x32xf32>
    %cst = arith.constant dense<0.000000e+00> : vector<2x8xf32>
    %6 = vector.multi_reduction <add>, %5, %cst [2] : vector<2x8x32xf32> to vector<2x8xf32>
    %7 = vector.shape_cast %6 : vector<2x8xf32> to vector<2x8x1xf32>
    %cst_5 = arith.constant 1.000000e-24 : f32
    %8 = vector.broadcast %cst_5 : f32 to vector<2x8x1xf32>
    %9 = arith.maximumf %7, %8 : vector<2x8x1xf32>
    %10 = math.rsqrt %9 : vector<2x8x1xf32>
    %11 = vector.broadcast %10 : vector<2x8x1xf32> to vector<2x8x32xf32>
    %12 = arith.mulf %4, %11 : vector<2x8x32xf32>
    %13 = vector.shape_cast %12 : vector<2x8x32xf32> to vector<16x32xf32>
    %c0_6 = arith.constant 0 : index
    %c0_7 = arith.constant 0 : index
    %14 = vector.load %arg3[%c0_6, %c0_7] : memref<32x128xf32, #tpu.memory_space<vmem>>, vector<32x128xf32>
    %cst_8 = arith.constant dense<0.000000e+00> : vector<16x128xf32>
    %15 = tpu.matmul %13, %14, %cst_8 {dimension_numbers = #tpu.dot_dimension_numbers<[1], [0], [0], [1], [0, 0, 1, 1], [], []>} : vector<16x32xf32>, vector<32x128xf32>, vector<16x128xf32> -> vector<16x128xf32>
    %16 = vector.shape_cast %15 : vector<16x128xf32> to vector<2x8x128xf32>
    %17 = tpu.iota {dimensions = array<i32: 1>} : vector<2x8x128xi32>
    %c1_i32 = arith.constant 1 : i32
    %18 = tpu.dynamic_rotate %16 by %c1_i32 dim 1 : vector<2x8x128xf32>, i32 -> vector<2x8x128xf32>
    %c1_i32_9 = arith.constant 1 : i32
    %19 = vector.broadcast %c1_i32_9 : i32 to vector<2x8x128xi32>
    %20 = arith.cmpi sge, %17, %19 : vector<2x8x128xi32>
    %cst_10 = arith.constant 0.000000e+00 : f32
    %21 = vector.broadcast %cst_10 : f32 to vector<2x8x128xf32>
    %22 = arith.select %20, %18, %21 : vector<2x8x128xi1>, vector<2x8x128xf32>
    %c7_i32 = arith.constant 7 : i32
    %23 = tpu.dynamic_rotate %16 by %c7_i32 dim 1 : vector<2x8x128xf32>, i32 -> vector<2x8x128xf32>
    %c7_i32_11 = arith.constant 7 : i32
    %24 = vector.broadcast %c7_i32_11 : i32 to vector<2x8x128xi32>
    %25 = arith.cmpi slt, %17, %24 : vector<2x8x128xi32>
    %cst_12 = arith.constant 0.000000e+00 : f32
    %26 = vector.broadcast %cst_12 : f32 to vector<2x8x128xf32>
    %27 = arith.select %25, %23, %26 : vector<2x8x128xi1>, vector<2x8x128xf32>
    %28 = tpu.concatenate %22, %16, %27 in 2 : vector<2x8x128xf32>, vector<2x8x128xf32>, vector<2x8x128xf32> -> vector<2x8x384xf32>
    %29 = vector.shape_cast %28 : vector<2x8x384xf32> to vector<16x384xf32>
    %c0_13 = arith.constant 0 : index
    %c0_14 = arith.constant 0 : index
    %30 = vector.load %arg4[%c0_13, %c0_14] : memref<384x128xf32, #tpu.memory_space<vmem>>, vector<384x128xf32>
    %cst_15 = arith.constant dense<0.000000e+00> : vector<16x128xf32>
    %31 = tpu.matmul %29, %30, %cst_15 {dimension_numbers = #tpu.dot_dimension_numbers<[1], [0], [0], [1], [0, 0, 1, 1], [], []>} : vector<16x384xf32>, vector<384x128xf32>, vector<16x128xf32> -> vector<16x128xf32>
    %c0_16 = arith.constant 0 : index
    %c0_17 = arith.constant 0 : index
    %32 = vector.load %arg5[%c0_16, %c0_17] : memref<1x128xf32, #tpu.memory_space<vmem>>, vector<1x128xf32>
    %33 = vector.broadcast %32 : vector<1x128xf32> to vector<16x128xf32>
    %34 = arith.addf %31, %33 : vector<16x128xf32>
    %cst_18 = arith.constant 0.000000e+00 : f32
    %35 = vector.broadcast %cst_18 : f32 to vector<16x128xf32>
    %36 = arith.maximumf %34, %35 : vector<16x128xf32>
    %37 = vector.shape_cast %36 : vector<16x128xf32> to vector<2x8x128xf32>
    %cst_19 = arith.constant dense<0xFF800000> : vector<2x8xf32>
    %38 = vector.multi_reduction <maximumf>, %37, %cst_19 [2] : vector<2x8x128xf32> to vector<2x8xf32>
    %39 = vector.shape_cast %38 : vector<2x8xf32> to vector<2x8x1xf32>
    %40 = math.exp %39 : vector<2x8x1xf32>
    %41 = arith.mulf %40, %2 : vector<2x8x1xf32>
    %cst_20 = arith.constant dense<0.000000e+00> : vector<2x1xf32>
    %42 = vector.multi_reduction <add>, %41, %cst_20 [1] : vector<2x8x1xf32> to vector<2x1xf32>
    %43 = vector.shape_cast %42 : vector<2x1xf32> to vector<2x1x1xf32>
    %44 = tpu.reciprocal %43 {approx = true} : vector<2x1x1xf32> -> vector<2x1x1xf32>
    %45 = vector.broadcast %44 : vector<2x1x1xf32> to vector<2x8x1xf32>
    %46 = arith.mulf %41, %45 : vector<2x8x1xf32>
    %47 = vector.broadcast %46 : vector<2x8x1xf32> to vector<2x8x32xf32>
    %48 = arith.mulf %1, %47 : vector<2x8x32xf32>
    %cst_21 = arith.constant dense<0.000000e+00> : vector<2x32xf32>
    %49 = vector.multi_reduction <add>, %48, %cst_21 [1] : vector<2x8x32xf32> to vector<2x32xf32>
    %c0_22 = arith.constant 0 : index
    %c0_23 = arith.constant 0 : index
    %50 = vector.load %arg6[%c0_22, %c0_23] : memref<32x128xf32, #tpu.memory_space<vmem>>, vector<32x128xf32>
    %cst_24 = arith.constant dense<0.000000e+00> : vector<2x128xf32>
    %51 = tpu.matmul %49, %50, %cst_24 {dimension_numbers = #tpu.dot_dimension_numbers<[1], [0], [0], [1], [0, 0, 1, 1], [], []>} : vector<2x32xf32>, vector<32x128xf32>, vector<2x128xf32> -> vector<2x128xf32>
    %c0_25 = arith.constant 0 : index
    %c0_26 = arith.constant 0 : index
    %52 = vector.load %arg7[%c0_25, %c0_26] : memref<1x128xf32, #tpu.memory_space<vmem>>, vector<1x128xf32>
    %53 = vector.broadcast %52 : vector<1x128xf32> to vector<2x128xf32>
    %54 = arith.addf %51, %53 : vector<2x128xf32>
    %cst_27 = arith.constant 0.000000e+00 : f32
    %55 = vector.broadcast %cst_27 : f32 to vector<2x128xf32>
    %56 = arith.maximumf %54, %55 : vector<2x128xf32>
    %c0_28 = arith.constant 0 : index
    %c0_29 = arith.constant 0 : index
    %57 = vector.load %arg8[%c0_28, %c0_29] : memref<128x128xf32, #tpu.memory_space<vmem>>, vector<128x128xf32>
    %cst_30 = arith.constant dense<0.000000e+00> : vector<2x128xf32>
    %58 = tpu.matmul %56, %57, %cst_30 {dimension_numbers = #tpu.dot_dimension_numbers<[1], [0], [0], [1], [0, 0, 1, 1], [], []>} : vector<2x128xf32>, vector<128x128xf32>, vector<2x128xf32> -> vector<2x128xf32>
    %c0_31 = arith.constant 0 : index
    %c0_32 = arith.constant 0 : index
    %59 = vector.load %arg9[%c0_31, %c0_32] : memref<1x128xf32, #tpu.memory_space<vmem>>, vector<1x128xf32>
    %60 = vector.broadcast %59 : vector<1x128xf32> to vector<2x128xf32>
    %61 = arith.addf %58, %60 : vector<2x128xf32>
    %c0_33 = arith.constant 0 : index
    %c0_34 = arith.constant 0 : index
    %62 = vector.load %arg10[%c0_33, %c0_34] : memref<2x128xf32, #tpu.memory_space<vmem>>, vector<2x128xf32>
    tpu.vector_store %arg10[%c0_33, %c0_34], %61 {strides = array<i32>} : memref<2x128xf32, #tpu.memory_space<vmem>>, vector<2x128xf32>,
    %cst_35 = arith.constant dense<0xFF800000> : vector<2x8xf32>
    %63 = vector.multi_reduction <maximumf>, %37, %cst_35 [2] : vector<2x8x128xf32> to vector<2x8xf32>
    %c0_36 = arith.constant 0 : index
    %c0_37 = arith.constant 0 : index
    %64 = vector.load %arg11[%c0_36, %c0_37] : memref<2x8xf32, #tpu.memory_space<vmem>>, vector<2x8xf32>
    tpu.vector_store %arg11[%c0_36, %c0_37], %63 {strides = array<i32>} : memref<2x8xf32, #tpu.memory_space<vmem>>, vector<2x8xf32>,
    return
  }
  func.func @transform_0(%arg0: i32) -> (i32, i32, i32) {
    %c0_i32 = arith.constant 0 : i32
    %c0_i32_0 = arith.constant 0 : i32
    %c0_i32_1 = arith.constant 0 : i32
    return %arg0, %c0_i32, %c0_i32_0 : i32, i32, i32
  }
  func.func @transform_1(%arg0: i32) -> (i32, i32, i32) {
    %c0_i32 = arith.constant 0 : i32
    %c0_i32_0 = arith.constant 0 : i32
    %c0_i32_1 = arith.constant 0 : i32
    return %arg0, %c0_i32, %c0_i32_0 : i32, i32, i32
  }
  func.func @transform_2(%arg0: i32) -> (i32, i32) {
    %c0_i32 = arith.constant 0 : i32
    %c0_i32_0 = arith.constant 0 : i32
    %c0_i32_1 = arith.constant 0 : i32
    return %c0_i32, %c0_i32_0 : i32, i32
  }
  func.func @transform_3(%arg0: i32) -> (i32, i32) {
    %c0_i32 = arith.constant 0 : i32
    %c0_i32_0 = arith.constant 0 : i32
    %c0_i32_1 = arith.constant 0 : i32
    return %c0_i32, %c0_i32_0 : i32, i32
  }
  func.func @transform_4(%arg0: i32) -> (i32, i32) {
    %c0_i32 = arith.constant 0 : i32
    %c0_i32_0 = arith.constant 0 : i32
    %c0_i32_1 = arith.constant 0 : i32
    return %c0_i32, %c0_i32_0 : i32, i32
  }
  func.func @transform_5(%arg0: i32) -> (i32, i32) {
    %c0_i32 = arith.constant 0 : i32
    %c0_i32_0 = arith.constant 0 : i32
    %c0_i32_1 = arith.constant 0 : i32
    return %c0_i32, %c0_i32_0 : i32, i32
  }
  func.func @transform_6(%arg0: i32) -> (i32, i32) {
    %c0_i32 = arith.constant 0 : i32
    %c0_i32_0 = arith.constant 0 : i32
    %c0_i32_1 = arith.constant 0 : i32
    return %c0_i32, %c0_i32_0 : i32, i32
  }
  func.func @transform_7(%arg0: i32) -> (i32, i32) {
    %c0_i32 = arith.constant 0 : i32
    %c0_i32_0 = arith.constant 0 : i32
    %c0_i32_1 = arith.constant 0 : i32
    return %c0_i32, %c0_i32_0 : i32, i32
  }
  func.func @transform_8(%arg0: i32) -> (i32, i32) {
    %c0_i32 = arith.constant 0 : i32
    %c0_i32_0 = arith.constant 0 : i32
    %c0_i32_1 = arith.constant 0 : i32
    return %c0_i32, %c0_i32_0 : i32, i32
  }
  func.func @transform_9(%arg0: i32) -> (i32, i32) {
    %c0_i32 = arith.constant 0 : i32
    %c0_i32_0 = arith.constant 0 : i32
    return %arg0, %c0_i32 : i32, i32
  }
  func.func @transform_10(%arg0: i32) -> (i32, i32) {
    %c0_i32 = arith.constant 0 : i32
    %c0_i32_0 = arith.constant 0 : i32
    return %arg0, %c0_i32 : i32, i32
  }
}

</mosaic_0001>

<bundles_post_ra>
// kernel: tpu_custom_call.1
= control target key start
LH: loop header
LB: loop body
LE: loop exit
PB: predicated region body
PF: predicated region fallthrough
CT: control target
= control target key end

     0   :  { %16 = vsyncpa [#allocation3], 0  ;;  %s1397_s0 = inlined_call_operand.hbm [shape: bf16[2,8,32], index: 0, kind: input, shape index: {}]   ;;  %s1398_s1 = inlined_call_operand.vmem [shape: f32[2,8,1], index: 1, kind: input, shape index: {}]   ;;  %s1399_s2 = inlined_call_operand.hbm [shape: f32[32,128], index: 2, kind: input, shape index: {}]   ;;  %s1400_s3 = inlined_call_operand.hbm [shape: f32[384,128], index: 3, kind: input, shape index: {}]   ;;  %s1401_s4 = inlined_call_operand.vmem [shape: f32[1,128], index: 4, kind: input, shape index: {}]   ;;  %s1402_s5 = inlined_call_operand.vmem [shape: f32[32,128], index: 5, kind: input, shape index: {}]   ;;  %s1403_s6 = inlined_call_operand.vmem [shape: f32[1,128], index: 6, kind: input, shape index: {}]   ;;  %s1404_s7 = inlined_call_operand.hbm [shape: f32[128,128], index: 7, kind: input, shape index: {}]   ;;  %s1405_s8 = inlined_call_operand.vmem [shape: f32[1,128], index: 8, kind: input, shape index: {}]   ;;  %s1406_s9 = inlined_call_operand.hbm [shape: f32[2,128], index: 9, kind: output, shape index: {0}]   ;;  %s1407_s10 = inlined_call_operand.hbm [shape: f32[2,8], index: 10, kind: output, shape index: {1}]  }
   0x1   :  { %17 = vsyncpa [#allocation6], 0 }
   0x2   :  { %18 = vsyncpa [#allocation9], 0 }
   0x3   :  { %19 = vsyncpa [#allocation4], 0 }
   0x4   :  { %20 = vsyncpa [#allocation12], 0  ;;  %s1174_s13 = smov [#allocation5]   ;;  %s1032_s17 = scalar_lea.hbm %s1399_s2, 512 }
   0x5   :  { %s40_s14 = sshll.u32 %s1174_s13, 4  ;;  %p1033_p0 = scmp.ne.s32.totalorder %s1399_s2, %s1032_s17  ;;  %s41_s14 = int_to_ptr.vmem [resolvable:$true] %s40_s14 }
   0x6   :  { %p1036_p1 = scmp.lt.u32.totalorder %s1032_s17, %s1399_s2 }
   0x8   :  { %p1038_p2 = pnand %p1036_p1, %p1033_p0 }
   0xa   :  { %1041 = shalt.err (!%p1038_p2)
}
   0xb   :  { %s1042_s22 = scalar_lea.vmem %s41_s14, 512  ;;  %p1047_p4 = scmp.lt.s32.totalorder %s41_s14, %s41_s14 }
   0xc   :  { %p1043_p3 = scmp.ne.s32.totalorder %s41_s14, %s1042_s22  ;;  %p1048_p5 = scmp.lt.s32.totalorder %s1042_s22, %s1042_s22 }
   0xe   :  { %p1049_p6 = por %p1048_p5, %p1047_p4 }
  0x10   :  { %p1050_p7 = pnand %p1049_p6, %p1043_p3 }
  0x12   :  { %1053 = shalt.err (!%p1050_p7)
}
  0x13   :  { %s1175_s23 = smov 128   ;;  %s1176_s24 = smov 8  }
  0x14   :  { %46 = dma.hbm_to_vmem [thread:$0]  %s1399_s2, 512, %s41_s14, [#allocation6], %s1175_s23, %s1175_s23, %s1176_s24  }
  0x15   :  { %s1177_s27 = smov [#allocation2]   ;;  %s1054_s11 = scalar_lea.hbm %s1397_s0, 128 }
  0x16   :  { %s26_s28 = sshll.u32 %s1177_s27, 4  ;;  %p1055_p8 = scmp.ne.s32.totalorder %s1397_s0, %s1054_s11  ;;  %s27_s28 = int_to_ptr.vmem [resolvable:$true] %s26_s28 }
  0x17   :  { %p1058_p9 = scmp.lt.u32.totalorder %s1054_s11, %s1397_s0 }
  0x19   :  { %p1060_p10 = pnand %p1058_p9, %p1055_p8 }
  0x1b   :  { %1063 = shalt.err (!%p1060_p10)
}
  0x1c   :  { %s1064_s17 = scalar_lea.vmem %s27_s28, 128  ;;  %p1069_p12 = scmp.lt.s32.totalorder %s27_s28, %s27_s28 }
  0x1d   :  { %p1065_p11 = scmp.ne.s32.totalorder %s27_s28, %s1064_s17  ;;  %p1070_p13 = scmp.lt.s32.totalorder %s1064_s17, %s1064_s17 }
  0x1f   :  { %p1071_p0 = por %p1070_p13, %p1069_p12 }
  0x21   :  { %p1072_p1 = pnand %p1071_p0, %p1065_p11 }
  0x23   :  { %1075 = shalt.err (!%p1072_p1)
}
  0x24   :  { %s1178_s2 = smov 64   ;;  %s1179_s14 = smov 4  }
  0x25   :  { %32 = dma.hbm_to_vmem [thread:$0]  %s1397_s0, 128, %s27_s28, [#allocation3], %s1178_s2, %s1178_s2, %s1179_s14  }
  0x26   :  { %s1180_s20 = smov [#allocation7]   ;;  %s1181_s22 = smov [#allocation8]  }
  0x27   :  { %s52_s21 = sshll.u32 %s1180_s20, 4  ;;  %s70_s25 = sshll.u32 %s1181_s22, 4  ;;  %s53_s21 = int_to_ptr.vmem [resolvable:$true] %s52_s21  ;;  %s1270_s25 = int_to_ptr.vmem [resolvable:$true] %s70_s25 }
  0x28   :  { %s1076_s29 = scalar_lea.hbm %s1400_s3, 6144 }
  0x29   :  { %p1077_p2 = scmp.ne.s32.totalorder %s1400_s3, %s1076_s29  ;;  %p1080_p3 = scmp.lt.u32.totalorder %s1076_s29, %s1400_s3 }
  0x2b   :  { %p1082_p4 = pnand %p1080_p3, %p1077_p2 }
  0x2d   :  { %1085 = shalt.err (!%p1082_p4)
}
  0x2e   :  { %s1086_s0 = scalar_lea.vmem %s53_s21, 6144  ;;  %p1091_p6 = scmp.lt.s32.totalorder %s53_s21, %s53_s21 }
  0x2f   :  { %p1087_p5 = scmp.ne.s32.totalorder %s53_s21, %s1086_s0  ;;  %p1092_p7 = scmp.lt.s32.totalorder %s1086_s0, %s1086_s0 }
  0x31   :  { %p1093_p8 = por %p1092_p7, %p1091_p6 }
  0x33   :  { %p1094_p9 = pnand %p1093_p8, %p1087_p5 }
  0x35   :  { %1097 = shalt.err (!%p1094_p9)
}
  0x36   :  { %58 = dma.hbm_to_vmem [thread:$0]  %s1400_s3, 6144, %s53_s21, [#allocation6], %s1175_s23, %s1175_s23, %s1176_s24  }
  0x37   :  { %s1098_s2 = scalar_lea.hbm %s1404_s7, 2048 }
  0x38   :  { %p1099_p10 = scmp.ne.s32.totalorder %s1404_s7, %s1098_s2  ;;  %p1102_p11 = scmp.lt.u32.totalorder %s1098_s2, %s1404_s7 }
  0x3a   :  { %p1104_p12 = pnand %p1102_p11, %p1099_p10 }
  0x3c   :  { %1107 = shalt.err (!%p1104_p12)
}
  0x3d   :  { %s1108_s22 = scalar_lea.vmem %s1270_s25, 2048  ;;  %p1113_p0 = scmp.lt.s32.totalorder %s1270_s25, %s1270_s25 }
  0x3e   :  { %p1109_p13 = scmp.ne.s32.totalorder %s1270_s25, %s1108_s22  ;;  %p1114_p1 = scmp.lt.s32.totalorder %s1108_s22, %s1108_s22 }
  0x40   :  { %p1115_p2 = por %p1114_p1, %p1113_p0 }
  0x42   :  { %p1116_p3 = pnand %p1115_p2, %p1109_p13 }
  0x44   :  { %1119 = shalt.err (!%p1116_p3)
}
  0x45   :  { %76 = dma.hbm_to_vmem [thread:$0]  %s1404_s7, 2048, %s1270_s25, [#allocation9], %s1175_s23, %s1175_s23, %s1176_s24  }
  0x46   :  { %1164 = dma.done.wait [#allocation3], 128  }
  0x47   :  { %1165 = vsyncadd [#allocation3], 4294967168 }
  0x48   :  { %1166 = dma.done.wait [#allocation6], 6656  }
  0x49   :  { %1167 = vsyncadd [#allocation6], 4294960640 }
  0x4a   :  { %1168 = dma.done.wait [#allocation9], 2048  }
  0x4b   :  { %1169 = vsyncadd [#allocation9], 4294965248  ;;  %v1182_v0 = vmov 0   ;;  %v1310_v1 = vld [vmem:[%s1398_s1] sm:$0xff]  ;;  %v1316_v2 = vld [vmem:[%s1398_s1 + $0x8] sm:$0xff]  ;;  %vm111_vm0 = vcmask 261120  }
  0x4c   :  { %1018 = vset.pattern.permute.xlu0 %v1182_v0  ;;  %1019 = vset.pattern.permute.xlu1 %v1182_v0  ;;  %v1319_v3 = vld [vmem:[#allocation2] sm:$0xff]   ;;  %v124_v14 = vld [vmem:[#allocation5] sm:$0xff]  ;;  %v125_v15 = vld [vmem:[#allocation5 + $0x8] sm:$0xff]  ;;  %vm496_vm3 = vcmask 1041409   ;;  %vm679_vm4 = vcmask 58368   ;;  %vm438_vm5 = vcmask 7168  }
  0x4d   :  { %99 = vperm.xlu0 %1018, %v1310_v1   ;;  %v724_v4 = vunpack.c.l.bf16 %v1319_v3  ;;  %v725_v7 = vunpack.c.h.bf16 %v1319_v3  ;;  %v126_v16 = vld [vmem:[#allocation5 + $0x10] sm:$0xff]  ;;  %v902_v17 = vpack.c.bf16 %v125_v15, %v124_v14  ;;  %v127_v18 = vld [vmem:[#allocation5 + $0x18] sm:$0xff]  ;;  %v237_v20 = vld [vmem:[#allocation7 + $0x80] sm:$0xff]  ;;  %vm1184_vm6 = vmmov 0   ;;  %s1186_s15 = smov [#allocation11]  }
  0x4e   :  { %v906_v19 = vpack.c.bf16 %v127_v18, %v126_v16  ;;  %v238_v21 = vld [vmem:[#allocation7 + $0x88] sm:$0xff]  ;;  %v253_v23 = vld [vmem:[#allocation7 + $0x100] sm:$0xff]  ;;  %v255_v26 = vld [vmem:[#allocation7 + $0x110] sm:$0xff]  ;;  %s697_s16 = sshll.u32 %s1186_s15, 4  ;;  %s698_s16 = int_to_ptr.vmem [resolvable:$true] %s697_s16 }
  0x4f   :  { %903 = vmatprep.subr.bf16.mxu1 %v902_v17  ;;  %v910_v22 = vpack.c.bf16 %v238_v21, %v237_v20  ;;  %v254_v24 = vld [vmem:[#allocation7 + $0x108] sm:$0xff]  ;;  %v256_v27 = vld [vmem:[#allocation7 + $0x118] sm:$0xff]  ;;  %v257_v29 = vld [vmem:[#allocation7 + $0x120] sm:$0xff]  ;;  %s1120_s17 = scalar_lea.vmem %s698_s16, 32  ;;  %p1125_p5 = scmp.lt.s32.totalorder %s698_s16, %s698_s16 }
  0x50   :  { %905 = vmatpush3.bf16.msra.mxu1 %v902_v17  ;;  %v942_v25 = vpack.c.bf16 %v254_v24, %v253_v23  ;;  %v946_v28 = vpack.c.bf16 %v256_v27, %v255_v26  ;;  %v258_v30 = vld [vmem:[#allocation7 + $0x128] sm:$0xff]  ;;  %v259_v32 = vld [vmem:[#allocation7 + $0x130] sm:$0xff]  ;;  %v260_v33 = vld [vmem:[#allocation7 + $0x138] sm:$0xff]  ;;  %p1121_p4 = scmp.ne.s32.totalorder %s698_s16, %s1120_s17  ;;  %p1126_p6 = scmp.lt.s32.totalorder %s1120_s17, %s1120_s17 }
  0x51   :  { %104 = vperm.xlu0 %1018, %v1316_v2   ;;  %907 = vmatprep.subr.bf16.mxu1 %v906_v19  ;;  %v950_v31 = vpack.c.bf16 %v258_v30, %v257_v29  ;;  %v954_v34 = vpack.c.bf16 %v260_v33, %v259_v32  ;;  %v261_v35 = vld [vmem:[#allocation7 + $0x140] sm:$0xff]  ;;  %v262_v36 = vld [vmem:[#allocation7 + $0x148] sm:$0xff]  ;;  %v263_v38 = vld [vmem:[#allocation7 + $0x150] sm:$0xff] }
  0x52   :  { %943 = vmatprep.subr.bf16.mxu0 %v942_v25  ;;  %v958_v37 = vpack.c.bf16 %v262_v36, %v261_v35  ;;  %v264_v39 = vld [vmem:[#allocation7 + $0x158] sm:$0xff]  ;;  %v265_v41 = vld [vmem:[#allocation7 + $0x160] sm:$0xff]  ;;  %v266_v42 = vld [vmem:[#allocation7 + $0x168] sm:$0xff]  ;;  %p1127_p7 = por %p1126_p6, %p1125_p5 }
  0x53   :  { %945 = vmatpush3.bf16.msra.mxu0 %v942_v25  ;;  %v962_v40 = vpack.c.bf16 %v264_v39, %v263_v38  ;;  %v966_v43 = vpack.c.bf16 %v266_v42, %v265_v41  ;;  %v221_v50 = vld [vmem:[#allocation7] sm:$0xff]  ;;  %v222_v51 = vld [vmem:[#allocation7 + $0x8] sm:$0xff]  ;;  %v239_v52 = vld [vmem:[#allocation7 + $0x90] sm:$0xff]  ;;  %v209_v41 = vlaneseq }
  0x54   :  { %909 = vmatpush3.bf16.msra.mxu1 %v906_v19  ;;  %947 = vmatprep.subr.bf16.mxu0 %v946_v28  ;;  %v240_v53 = vld [vmem:[#allocation7 + $0x98] sm:$0xff]  ;;  %v912_v55 = vpack.c.bf16 %v222_v51, %v221_v50  ;;  %v223_v58 = vld [vmem:[#allocation7 + $0x10] sm:$0xff]  ;;  %v241_v60 = vld [vmem:[#allocation7 + $0xa0] sm:$0xff]  ;;  %p1128_p8 = pnand %p1127_p7, %p1121_p4 }
  0x55   :  { %911 = vmatprep.subr.bf16.mxu1 %v910_v22  ;;  %v914_v57 = vpack.c.bf16 %v240_v53, %v239_v52  ;;  %v224_v59 = vld [vmem:[#allocation7 + $0x18] sm:$0xff]  ;;  %v242_v61 = vld [vmem:[#allocation7 + $0xa8] sm:$0xff]  ;;  %v225_v0 = vld [vmem:[#allocation7 + $0x20] sm:$0xff]  ;;  %v210_v42 = vshrl.u32 %v209_v41, 7 }
  0x56   :  { %v916_v62 = vpack.c.bf16 %v224_v59, %v223_v58  ;;  %v918_v63 = vpack.c.bf16 %v242_v61, %v241_v60  ;;  %v246_v14 = vld [vmem:[#allocation7 + $0xc8] sm:$0xff]  ;;  %v229_v17 = vld [vmem:[#allocation7 + $0x40] sm:$0xff]  ;;  %v247_v19 = vld [vmem:[#allocation7 + $0xd0] sm:$0xff] }
  0x57   :  { %949 = vmatpush3.bf16.msra.mxu0 %v946_v28  ;;  %v230_v18 = vld [vmem:[#allocation7 + $0x48] sm:$0xff]  ;;  %v248_v20 = vld [vmem:[#allocation7 + $0xd8] sm:$0xff]  ;;  %v231_v23 = vld [vmem:[#allocation7 + $0x50] sm:$0xff]  ;;  %vm213_vm1 = vcmp.ge.s32.totalorder %v210_v42, 1  ;;  %vm218_vm2 = vcmp.lt.s32.totalorder %v210_v42, 7 }
  0x58   :  { %951 = vmatprep.subr.bf16.mxu0 %v950_v31  ;;  %v928_v21 = vpack.c.bf16 %v230_v18, %v229_v17  ;;  %v930_v22 = vpack.c.bf16 %v248_v20, %v247_v19  ;;  %v232_v24 = vld [vmem:[#allocation7 + $0x58] sm:$0xff]  ;;  %v249_v25 = vld [vmem:[#allocation7 + $0xe0] sm:$0xff]  ;;  %v250_v26 = vld [vmem:[#allocation7 + $0xe8] sm:$0xff] }
  0x59   :  { %v932_v27 = vpack.c.bf16 %v232_v24, %v231_v23  ;;  %v934_v28 = vpack.c.bf16 %v250_v26, %v249_v25  ;;  %v233_v29 = vld [vmem:[#allocation7 + $0x60] sm:$0xff]  ;;  %v234_v30 = vld [vmem:[#allocation7 + $0x68] sm:$0xff]  ;;  %v251_v32 = vld [vmem:[#allocation7 + $0xf0] sm:$0xff] }
  0x5a   :  { %v252_v33 = vld [vmem:[#allocation7 + $0xf8] sm:$0xff]  ;;  %v235_v35 = vld [vmem:[#allocation7 + $0x70] sm:$0xff] }
  0x5b   :  { %953 = vmatpush3.bf16.msra.mxu0 %v950_v31  ;;  %v936_v31 = vpack.c.bf16 %v234_v30, %v233_v29  ;;  %v236_v36 = vld [vmem:[#allocation7 + $0x78] sm:$0xff] }
  0x5c   :  { %955 = vmatprep.subr.bf16.mxu0 %v954_v34  ;;  %v940_v38 = vpack.c.bf16 %v236_v36, %v235_v35  ;;  %v268_v39 = vld [vmem:[#allocation7 + $0x178] sm:$0xff]  ;;  %v484_v35 = vld [vmem:[%s1402_s5 + $0x8] sm:$0xff] }
  0x5d   :  { %v714_v52 = vld [vmem:[%s1401_s4] ss:$0 sm:$0xff] }
  0x5e   :  { %v586_v3 = vld [vmem:[#allocation8 + $0x78] sm:$0xff] }
  0x5f   :  { %957 = vmatpush3.bf16.msra.mxu0 %v954_v34  ;;  %v938_v34 = vpack.c.bf16 %v252_v33, %v251_v32 }
  0x60   :  { %959 = vmatprep.subr.bf16.mxu0 %v958_v37 }
  0x63   :  { %961 = vmatpush3.bf16.msra.mxu0 %v958_v37  ;;  %v267_v37 = vld [vmem:[#allocation7 + $0x170] sm:$0xff] }
  0x64   :  { %963 = vmatprep.subr.bf16.mxu0 %v962_v40 }
  0x67   :  { %965 = vmatpush3.bf16.msra.mxu0 %v962_v40  ;;  %v970_v40 = vpack.c.bf16 %v268_v39, %v267_v37  ;;  %v1183_v37 = vmov 0.0|0.0   ;;  %v486_v39 = vld [vmem:[%s1402_s5 + $0x18] sm:$0xff] }
  0x68   :  { %967 = vmatprep.subr.bf16.mxu0 %v966_v43 }
  0x6b   :  { %969 = vmatpush3.bf16.msra.mxu0 %v966_v43 }
  0x6c   :  { %971 = vmatprep.subr.bf16.mxu0 %v970_v40 }
  0x6f   :  { %973 = vmatpush3.bf16.msra.mxu0 %v970_v40 }
  0x70   :  { %980 = vmatprep.subr.bf16.mxu0 %v1183_v37 }
  0xcc   :  { %v100_v5 = vpop.permute.xlu0 %99 }
  0xcd   :  { %v1324_v6 = vmul.f32 %v724_v4, %v100_v5  ;;  %v226_v5 = vld [vmem:[#allocation7 + $0x28] sm:$0xff] }
  0xcf   :  { %v109_v8 = vmul.f32 %v1324_v6, %v1324_v6 }
  0xd0   :  { %v105_v9 = vpop.permute.xlu0 %104 }
  0xd1   :  { %v1331_v10 = vmul.f32 %v725_v7, %v105_v9  ;;  %v112_v11 = vsel %vm111_vm0, %v109_v8, 0.0  ;;  %v244_v8 = vld [vmem:[#allocation7 + $0xb8] sm:$0xff]  ;;  %v920_v9 = vpack.c.bf16 %v226_v5, %v225_v0  ;;  %v668_v0 = vand.u32 127, %v209_v41 }
  0xd2   :  { %113 = vadd.xlane.f32.xlu1 %v112_v11  ;;  %v1185_v41 = vmov 0.0  }
  0xd3   :  { %v110_v12 = vmul.f32 %v1331_v10, %v1331_v10 }
  0xd5   :  { %v115_v13 = vsel %vm111_vm0, %v110_v12, 0.0  ;;  %v228_v12 = vld [vmem:[#allocation7 + $0x38] sm:$0xff] }
  0xd6   :  { %116 = vadd.xlane.f32.xlu1 %v115_v13  ;;  %v245_v13 = vld [vmem:[#allocation7 + $0xc0] sm:$0xff] }
  0xd7   :  { %v926_v16 = vpack.c.bf16 %v246_v14, %v245_v13 }
 0x15f   :  { %v114_v44 = vpop.xlane.xlu1 %113 }
 0x160   :  { %v118_v45 = vmax.f32 %v114_v44, 1e-24 }
 0x162   :  { %1020 = vrsqrt.f32 %v118_v45 }
 0x163   :  { %v117_v46 = vpop.xlane.xlu1 %116 }
 0x164   :  { %v119_v47 = vmax.f32 %v117_v46, 1e-24 }
 0x166   :  { %1022 = vrsqrt.f32 %v119_v47 }
 0x16c   :  { %v1021_v48 = vpop.eup %1020 }
 0x16d   :  { %v122_v49 = vmul.f32 %v1021_v48, %v1324_v6  ;;  %v243_v6 = vld [vmem:[#allocation7 + $0xb0] sm:$0xff] }
 0x16e   :  { %v922_v11 = vpack.c.bf16 %v244_v8, %v243_v6  ;;  %v671_v6 = vsub.s32 %v668_v0, %v210_v42  ;;  %v571_v42 = vld [vmem:[#allocation8] sm:$0xff] }
 0x16f   :  { %818 = vmatprep.mubr.msk.f32.mxu1 %vm111_vm0, %v122_v49 }
 0x170   :  { %v1023_v54 = vpop.eup %1022 }
 0x171   :  { %v123_v56 = vmul.f32 %v1023_v54, %v1331_v10  ;;  %v227_v10 = vld [vmem:[#allocation7 + $0x30] sm:$0xff] }
 0x172   :  { %v924_v15 = vpack.c.bf16 %v228_v12, %v227_v10 }
 0x173   :  { %819 = vmatmul.mubr.msk.f32.vlgmr.msra.gmra.mrb[0].mxu1 %vm111_vm0, %v123_v56 }
 0x174   :  { %913 = vmatpush3.bf16.msra.mxu1 %v912_v55 }
 0x175   :  { %915 = vmatprep.subr.bf16.mxu1 %v914_v57 }
 0x178   :  { %917 = vmatpush3.bf16.msra.mxu1 %v916_v62 }
 0x179   :  { %919 = vmatprep.subr.bf16.mxu1 %v918_v63 }
 0x17c   :  { %921 = vmatpush3.bf16.msra.mxu1 %v920_v9 }
 0x17d   :  { %923 = vmatprep.subr.bf16.mxu1 %v922_v11 }
 0x180   :  { %925 = vmatpush3.bf16.msra.mxu1 %v924_v15 }
 0x181   :  { %927 = vmatprep.subr.bf16.mxu1 %v926_v16 }
 0x184   :  { %929 = vmatpush3.bf16.msra.mxu1 %v928_v21 }
 0x185   :  { %931 = vmatprep.subr.bf16.mxu1 %v930_v22 }
 0x188   :  { %933 = vmatpush3.bf16.msra.mxu1 %v932_v27 }
 0x189   :  { %935 = vmatprep.subr.bf16.mxu1 %v934_v28 }
 0x18c   :  { %937 = vmatpush3.bf16.msra.mxu1 %v936_v31 }
 0x18d   :  { %939 = vmatprep.subr.bf16.mxu1 %v938_v34 }
 0x190   :  { %941 = vmatpush3.bf16.msra.mxu1 %v940_v38  ;;  %v485_v38 = vld [vmem:[%s1402_s5 + $0x10] sm:$0xff] }
 0x191   :  { %974 = vmatprep.subr.bf16.mxu1 %v1183_v37  ;;  %v978_v40 = vpack.c.bf16 %v486_v39, %v485_v38 }
 0x246   :  { %v820_v43 = vpop.f32.mrb[0].mxu1 }
 0x247   :  { %v200_v44 = vpop.f32.mrb[1].mxu1  ;;  %v217_v47 = vrot.slane %v820_v43, 1  ;;  %v212_v48 = vrot.slane %v820_v43, 7 }
 0x248   :  { %v211_v45 = vrot.slane %v200_v44, 7  ;;  %340 = vmatprep.mubr.f32.mxu1 %v200_v44  ;;  %v216_v46 = vrot.slane %v200_v44, 1  ;;  %v573_v44 = vld [vmem:[#allocation8 + $0x10] sm:$0xff] }
 0x24a   :  { %715 = vmatmul.mubr.msk.f32.vlgmr.msra.gmra.mrb[2].mxu1 %vm213_vm1, %v211_v45  ;;  %853 = vmatprep.mubr.msk.f32.mxu0 %vm218_vm2, %v216_v46  ;;  %v574_v46 = vld [vmem:[#allocation8 + $0x18] sm:$0xff] }
 0x24b   :  { %345 = vmatprep.mubr.f32.mxu1 %v820_v43  ;;  %854 = vmatmul.mubr.msk.f32.vlgmr.msra.gmra.mrb[0].mxu0 %vm218_vm2, %v217_v47  ;;  %v572_v43 = vld [vmem:[#allocation8 + $0x8] sm:$0xff]  ;;  %v984_v47 = vpack.c.bf16 %v574_v46, %v573_v44 }
 0x24c   :  { %899 = vmatprep.mubr.msk.f32.mxu0 %vm1184_vm6, %v1185_v41  ;;  %v981_v45 = vpack.c.bf16 %v572_v43, %v571_v42 }
 0x24e   :  { %716 = vmatmul.mubr.msk.f32.gmra.mrb[4].mxu1 %vm213_vm1, %v212_v48  ;;  %982 = vmatpush3.bf16.msra.mxu0 %v981_v45  ;;  %v575_v48 = vld [vmem:[#allocation8 + $0x20] sm:$0xff] }
 0x24f   :  { %864 = vmatprep.mubr.msk.f32.mxu1 %vm1184_vm6, %v1185_v41  ;;  %983 = vmatprep.subr.bf16.mxu0 %v1183_v37 }
 0x252   :  { %985 = vmatpush3.bf16.msra.mxu0 %v984_v47 }
 0x253   :  { %986 = vmatprep.subr.bf16.mxu0 %v1183_v37 }
 0x31d   :  { %v764_v49 = vpop.f32.mrb[2].mxu1 }
 0x31e   :  { %v765_v50 = vpop.f32.mrb[3].mxu1  ;;  %v855_v51 = vpop.f32.mrb[0].mxu0 }
 0x31f   :  { %v766_v53 = vadd.f32 %v765_v50, %v764_v49  ;;  %v417_v54 = vpop.f32.mrb[1].mxu0  ;;  %v576_v49 = vld [vmem:[#allocation8 + $0x28] sm:$0xff] }
 0x320   :  { %v987_v50 = vpack.c.bf16 %v576_v49, %v575_v48 }
 0x321   :  { %v343_v55 = vadd.f32 %v766_v53, %v714_v52  ;;  %v767_v56 = vpop.f32.mrb[4].mxu1 }
 0x322   :  { %v768_v57 = vpop.f32.mrb[5].mxu1  ;;  %988 = vmatpush3.bf16.msra.mxu0 %v987_v50 }
 0x323   :  { %v418_v58 = vadd.f32 %v417_v54, %v343_v55  ;;  %v769_v59 = vadd.f32 %v768_v57, %v767_v56  ;;  %989 = vmatprep.subr.bf16.mxu0 %v1183_v37  ;;  %v579_v54 = vld [vmem:[#allocation8 + $0x40] sm:$0xff]  ;;  %v580_v55 = vld [vmem:[#allocation8 + $0x48] sm:$0xff]  ;;  %v581_v57 = vld [vmem:[#allocation8 + $0x50] sm:$0xff] }
 0x324   :  { %v993_v56 = vpack.c.bf16 %v580_v55, %v579_v54 }
 0x325   :  { %v426_v60 = vmax.f32 %v418_v58, 0.0  ;;  %v348_v61 = vadd.f32 %v769_v59, %v714_v52  ;;  %v578_v52 = vld [vmem:[#allocation8 + $0x38] sm:$0xff] }
 0x326   :  { %v582_v58 = vld [vmem:[#allocation8 + $0x58] sm:$0xff] }
 0x327   :  { %428 = vmax.xlane.f32.xlu0 %v426_v60  ;;  %v423_v62 = vadd.f32 %v855_v51, %v348_v61  ;;  %v577_v51 = vld [vmem:[#allocation8 + $0x30] sm:$0xff]  ;;  %v996_v59 = vpack.c.bf16 %v582_v58, %v581_v57  ;;  %v583_v60 = vld [vmem:[#allocation8 + $0x60] sm:$0xff]  ;;  %v584_v61 = vld [vmem:[#allocation8 + $0x68] sm:$0xff] }
 0x328   :  { %v990_v53 = vpack.c.bf16 %v578_v52, %v577_v51 }
 0x329   :  { %v427_v63 = vmax.f32 %v423_v62, 0.0  ;;  %v999_v62 = vpack.c.bf16 %v584_v61, %v583_v60 }
 0x32a   :  { %991 = vmatpush3.bf16.msra.mxu0 %v990_v53 }
 0x32b   :  { %430 = vmax.xlane.f32.xlu1 %v427_v63  ;;  %992 = vmatprep.subr.bf16.mxu0 %v1183_v37 }
 0x32e   :  { %994 = vmatpush3.bf16.msra.mxu0 %v993_v56 }
 0x32f   :  { %995 = vmatprep.subr.bf16.mxu0 %v1183_v37 }
 0x332   :  { %997 = vmatpush3.bf16.msra.mxu0 %v996_v59 }
 0x333   :  { %998 = vmatprep.subr.bf16.mxu0 %v1183_v37 }
 0x336   :  { %1000 = vmatpush3.bf16.msra.mxu0 %v999_v62 }
 0x337   :  { %1001 = vmatprep.subr.bf16.mxu0 %v1183_v37 }
 0x3b4   :  { %v429_v5 = vpop.xlane.xlu0 %428 }
 0x3b5   :  { %v432_v8 = vmul.f32 1.442695, %v429_v5  ;;  %v672_v11 = vrot.slane %v429_v5, %v671_v6 }
 0x3b7   :  { %1024 = vpow2.f32 %v432_v8 }
 0x3b8   :  { %v431_v9 = vpop.xlane.xlu1 %430 }
 0x3b9   :  { %v434_v10 = vmul.f32 1.442695, %v431_v9  ;;  %v676_v12 = vrot.slane %v431_v9, %v671_v6 }
 0x3bb   :  { %1026 = vpow2.f32 %v434_v10  ;;  %v677_v13 = vsel %vm496_vm3, %v676_v12, %v672_v11 }
 0x3bc   :  { %680 = vst.msk [vmem:[#allocation11] sm:$0x3] %vm679_vm4, %v677_v13 }
 0x3c1   :  { %v1025_v14 = vpop.eup %1024 }
 0x3c2   :  { %v436_v15 = vmul.f32 %v1025_v14, %v1310_v1 }
 0x3c4   :  { %v439_v16 = vsel %vm438_vm5, %v436_v15, 0.0 }
 0x3c5   :  { %v1027_v17 = vpop.eup %1026  ;;  %v440_v18 = vrot.slane %v439_v16, 4 }
 0x3c6   :  { %v437_v19 = vmul.f32 %v1027_v17, %v1316_v2  ;;  %v483_v2 = vld [vmem:[%s1402_s5] sm:$0xff] }
 0x3c7   :  { %v441_v20 = vadd.f32 %v440_v18, %v439_v16  ;;  %v975_v36 = vpack.c.bf16 %v484_v35, %v483_v2 }
 0x3c8   :  { %v446_v21 = vsel %vm438_vm5, %v437_v19, 0.0 }
 0x3c9   :  { %v442_v22 = vrot.slane %v441_v20, 2  ;;  %v447_v23 = vrot.slane %v446_v21, 4  ;;  %976 = vmatpush3.bf16.msra.mxu1 %v975_v36 }
 0x3ca   :  { %977 = vmatprep.subr.bf16.mxu1 %v1183_v37 }
 0x3cb   :  { %v443_v24 = vadd.f32 %v442_v22, %v441_v20  ;;  %v448_v25 = vadd.f32 %v447_v23, %v446_v21  ;;  %v585_v22 = vld [vmem:[#allocation8 + $0x70] sm:$0xff]  ;;  %v719_v23 = vld [vmem:[%s1403_s6] ss:$0 sm:$0xff] }
 0x3cd   :  { %v444_v26 = vrot.slane %v443_v24, 1  ;;  %v449_v27 = vrot.slane %v448_v25, 2  ;;  %979 = vmatpush3.bf16.msra.mxu1 %v978_v40 }
 0x3cf   :  { %v445_v28 = vadd.f32 %v444_v26, %v443_v24  ;;  %v450_v29 = vadd.f32 %v449_v27, %v448_v25 }
 0x3d1   :  { %1028 = vrcp.f32 %v445_v28  ;;  %v451_v30 = vrot.slane %v450_v29, 1 }
 0x3d3   :  { %v452_v31 = vadd.f32 %v451_v30, %v450_v29 }
 0x3d5   :  { %1030 = vrcp.f32 %v452_v31 }
 0x3db   :  { %v1029_v1 = vpop.eup %1028 }
 0x3dc   :  { %v455_v32 = vmul.f32 %v1029_v1, %v436_v15 }
 0x3de   :  { %459 = vperm.xlu1 %1019, %v455_v32  }
 0x3df   :  { %v1031_v33 = vpop.eup %1030 }
 0x3e0   :  { %v456_v34 = vmul.f32 %v1031_v33, %v437_v19 }
 0x3e2   :  { %464 = vperm.xlu1 %1019, %v456_v34  }
 0x45d   :  { %v460_v63 = vpop.permute.xlu1 %459 }
 0x45e   :  { %v467_v0 = vmul.f32 %v724_v4, %v460_v63 }
 0x460   :  { %v469_v5 = vsel %vm111_vm0, %v467_v0, 0.0 }
 0x461   :  { %v470_v6 = vrot.slane %v469_v5, 4  ;;  %v465_v8 = vpop.permute.xlu1 %464 }
 0x462   :  { %v468_v9 = vmul.f32 %v725_v7, %v465_v8  ;;  %v1002_v7 = vpack.c.bf16 %v586_v3, %v585_v22 }
 0x463   :  { %v471_v11 = vadd.f32 %v470_v6, %v469_v5 }
 0x464   :  { %v476_v10 = vsel %vm111_vm0, %v468_v9, 0.0  ;;  %1003 = vmatpush3.bf16.msra.mxu0 %v1002_v7 }
 0x465   :  { %v472_v12 = vrot.slane %v471_v11, 2  ;;  %v477_v13 = vrot.slane %v476_v10, 4 }
 0x467   :  { %v473_v14 = vadd.f32 %v472_v12, %v471_v11  ;;  %v478_v15 = vadd.f32 %v477_v13, %v476_v10 }
 0x469   :  { %v479_v16 = vrot.slane %v478_v15, 2  ;;  %v474_v17 = vrot.slane %v473_v14, 1 }
 0x46b   :  { %v480_v18 = vadd.f32 %v479_v16, %v478_v15  ;;  %v475_v20 = vadd.f32 %v474_v17, %v473_v14 }
 0x46d   :  { %v481_v19 = vrot.slane %v480_v18, 1 }
 0x46f   :  { %v482_v4 = vadd.f32 %v481_v19, %v480_v18 }
 0x471   :  { %v497_v21 = vsel %vm496_vm3, %v482_v4, %v475_v20 }
 0x472   :  { %865 = vmatmul.mubr.msk.f32.vlgmr.msra.gmra.mrb[6].mxu1 %vm111_vm0, %v497_v21 }
 0x545   :  { %v566_v24 = vpop.f32.mrb[6].mxu1 }
 0x546   :  { %v567_v25 = vadd.f32 %v719_v23, %v566_v24  ;;  %v866_v26 = vpop.f32.mrb[7].mxu1 }
 0x548   :  { %v570_v27 = vmax.f32 %v567_v25, 0.0 }
 0x54a   :  { %900 = vmatmul.mubr.f32.vlgmr.msra.gmra.mrb[2].mxu0 %v570_v27 }
 0x54b   :  { %1131 = shalt.err (!%p1128_p8)
}
 0x54c   :  { %s1132_s18 = scalar_lea.hbm %s1407_s10, 32 }
 0x54d   :  { %p1133_p9 = scmp.ne.s32.totalorder %s1407_s10, %s1132_s18  ;;  %p1136_p10 = scmp.lt.u32.totalorder %s1132_s18, %s1407_s10 }
 0x54f   :  { %p1138_p11 = pnand %p1136_p10, %p1133_p9 }
 0x551   :  { %1141 = shalt.err (!%p1138_p11)
}
 0x552   :  { %700 = dma.vmem_to_hbm [thread:$0]  %s698_s16, 32, %s1407_s10, [#allocation12]   ;;  %v721_v28 = vld [vmem:[%s1405_s8] ss:$0 sm:$0xff] }
 0x553   :  { %s1187_s29 = smov [#allocation10]  }
 0x554   :  { %s687_s30 = sshll.u32 %s1187_s29, 4  ;;  %s688_s30 = int_to_ptr.vmem [resolvable:$true] %s687_s30 }
 0x555   :  { %s1142_s1 = scalar_lea.vmem %s688_s30, 32  ;;  %p1147_p13 = scmp.lt.s32.totalorder %s688_s30, %s688_s30 }
 0x556   :  { %p1143_p12 = scmp.ne.s32.totalorder %s688_s30, %s1142_s1  ;;  %p1148_p0 = scmp.lt.s32.totalorder %s1142_s1, %s1142_s1 }
 0x558   :  { %p1149_p1 = por %p1148_p0, %p1147_p13 }
 0x55a   :  { %p1150_p2 = pnand %p1149_p1, %p1143_p12 }
 0x61d   :  { %v660_v29 = vpop.f32.mrb[2].mxu0 }
 0x61e   :  { %v661_v30 = vadd.f32 %v721_v28, %v660_v29  ;;  %v901_v31 = vpop.f32.mrb[3].mxu0 }
 0x620   :  { %664 = vst [vmem:[#allocation10] sm:$0x3] %v661_v30 }
 0x621   :  { %1153 = shalt.err (!%p1150_p2)
}
 0x622   :  { %s1154_s4 = scalar_lea.hbm %s1406_s9, 32 }
 0x623   :  { %p1155_p3 = scmp.ne.s32.totalorder %s1406_s9, %s1154_s4  ;;  %p1158_p4 = scmp.lt.u32.totalorder %s1154_s4, %s1406_s9 }
 0x625   :  { %p1160_p5 = pnand %p1158_p4, %p1155_p3 }
 0x627   :  { %1163 = shalt.err (!%p1160_p5)
}
 0x628   :  { %690 = dma.vmem_to_hbm [thread:$0]  %s688_s30, 32, %s1406_s9, [#allocation4]  }
 0x629   :  { %1170 = dma.done.wait [#allocation4], 32  }
 0x62a   :  { %1171 = vsyncadd [#allocation4], 4294967264 }
 0x62b   :  { %1172 = dma.done.wait [#allocation12], 32  }
 0x62c   :  { %1173 = vsyncadd [#allocation12], 4294967264 }
 0x62d   :  { %707 = vsyncpa [#allocation3], 1 }
 0x62e   :  { %708 = vsyncpa [#allocation6], 1 }
 0x62f   :  { %709 = vsyncpa [#allocation9], 1 }
 0x630   :  { %710 = vsyncpa [#allocation4], 1 }
 0x631   :  { %711 = vsyncpa [#allocation12], 1 }

</bundles_post_ra>
